<compile_context>
chip_gen: v7x
topology: tpu7x:2x2x1
jax: 0.10.0
libtpu: 0.0.40
codegen_flags: <defaults>
</compile_context>

<pallas_src>
import functools

import jax
import jax.numpy as jnp
from jax.experimental import pallas as pl
from jax.experimental.pallas import tpu as pltpu

LANE = 128        # TPU lane width (last-dim tiling unit)
BLOCK_M = 256     # node-row tile (output rows)
BLOCK_K = 2048    # contraction tile over neighbor nodes (1 MiB bf16 A tile at tm=256)


def _round_up(v, m):
    return (v + m - 1) // m * m


def _pad2(a, shape):
    return jnp.pad(a, [(0, s - d) for d, s in zip(a.shape, shape)])


def _pick_tile(n, pref):
    """Largest multiple of LANE that divides n and is <= pref (n % LANE == 0)."""
    t = min(pref, n)
    t -= t % LANE
    t = max(t, LANE)
    while n % t != 0:
        t -= LANE
    return t


def _vmem_limit_bytes(block_bytes, scratch_bytes):
    """Double-buffered pipelined blocks + persistent scratch + headroom, v7x-safe cap."""
    est = 2 * block_bytes + scratch_bytes + (8 << 20)
    return int(min(max(est, 32 << 20), 56 << 20))


# ----------------------------- Pallas kernels ------------------------------ #

def sage_conv_kernel(a_ref, x_ref, xr_ref, wcat_ref, b_ref, o_ref,
                     acc_ref, cat_ref, *, fp_in, apply_relu):
    """One SAGEConv row block, K-tiled: acc += A_tile @ X_tile; on the last K
    step: out = [acc | x_self] @ [Wl; Wr] + b (opt. relu)."""
    k = pl.program_id(1)

    @pl.when(k == 0)
    def _():
        acc_ref[...] = jnp.zeros(acc_ref.shape, acc_ref.dtype)

    # neighbor mean aggregation (bf16 MXU, f32 accumulate)
    acc_ref[...] += jnp.dot(a_ref[...], x_ref[...],
                            preferred_element_type=jnp.float32)

    @pl.when(k == pl.num_programs(1) - 1)
    def _():
        # stage the fused operand once per row block: [agg | x_self]
        cat_ref[:, :fp_in] = acc_ref[...].astype(cat_ref.dtype)
        cat_ref[:, fp_in:] = xr_ref[...]
        out = jnp.dot(cat_ref[...], wcat_ref[...],
                      preferred_element_type=jnp.float32)
        out = out + b_ref[...]
        if apply_relu:
            out = jnp.maximum(out, 0.0)
        o_ref[...] = out.astype(o_ref.dtype)


def tree_gate_kernel(xm_ref, at_ref, x_ref, xr_ref, wt_ref, bt_ref,
                     gw_ref, gb_ref, o_ref,
                     agg_ref, cat_ref, m_ref, d_ref, acc_ref, *,
                     fp_in, weight):
    """Online gated softmax over tree layers; adjacency K-tiled per layer."""
    l = pl.program_id(1)
    k = pl.program_id(2)
    n_l = pl.num_programs(1)
    n_k = pl.num_programs(2)

    # running softmax state: zero once per row block
    @pl.when((l == 0) & (k == 0))
    def _():
        m_ref[...] = jnp.full(m_ref.shape, -jnp.inf, m_ref.dtype)
        d_ref[...] = jnp.zeros(d_ref.shape, d_ref.dtype)
        acc_ref[...] = jnp.zeros(acc_ref.shape, acc_ref.dtype)

    # aggregation accumulator: zero at the start of each tree layer
    @pl.when(k == 0)
    def _():
        agg_ref[...] = jnp.zeros(agg_ref.shape, agg_ref.dtype)

    agg_ref[...] += jnp.dot(at_ref[...], x_ref[...],
                            preferred_element_type=jnp.float32)

    @pl.when(k == n_k - 1)
    def _():
        # tree SAGE projection for this layer
        cat_ref[:, :fp_in] = agg_ref[...].astype(cat_ref.dtype)
        cat_ref[:, fp_in:] = xr_ref[...]
        t = jnp.dot(cat_ref[...], wt_ref[...],
                    preferred_element_type=jnp.float32)
        t = jnp.maximum(t + bt_ref[...], 0.0)                      # (tm, fpo) f32
        # gating score: VPU multiply + lane reduction (no 1-column MXU pass)
        s = jnp.sum(t * gw_ref[...], axis=-1, keepdims=True) + gb_ref[...]  # (tm,1)

        # online (streaming) softmax update in f32
        m_new = jnp.maximum(m_ref[...], s)
        scale = jnp.exp(m_ref[...] - m_new)       # exp(-inf - finite) == 0 on layer 0
        p = jnp.exp(s - m_new)
        d_ref[...] = scale * d_ref[...] + p
        acc_ref[...] = scale * acc_ref[...] + p * t
        m_ref[...] = m_new

        @pl.when(l == n_l - 1)
        def _():
            # NOTE: approx reciprocal => alpha sums to 1 only to ~1e-3 relative.
            inv = pl.reciprocal(d_ref[...], approx=True)           # EUP slot
            o_ref[...] = xm_ref[...] + weight * (acc_ref[...] * inv)


# ------------------------------ Pallas wrappers ----------------------------- #

def sage_conv(adj, x, wcat, b, *, apply_relu, out_dtype):
    npad, fpi = x.shape
    fpo = wcat.shape[1]
    tm = _pick_tile(npad, BLOCK_M)
    tk = _pick_tile(npad, BLOCK_K)
    esz = jnp.dtype(x.dtype).itemsize
    osz = jnp.dtype(out_dtype).itemsize
    block_bytes = (tm * tk * esz + tk * fpi * esz + tm * fpi * esz +
                   2 * fpi * fpo * esz + fpo * 4 + tm * fpo * osz)
    scratch_bytes = tm * fpi * 4 + tm * 2 * fpi * esz
    kernel = functools.partial(sage_conv_kernel, fp_in=fpi, apply_relu=apply_relu)
    return pl.pallas_call(
        kernel,
        out_shape=jax.ShapeDtypeStruct((npad, fpo), out_dtype),
        grid=(npad // tm, npad // tk),
        in_specs=[
            pl.BlockSpec((tm, tk), lambda i, k: (i, k)),          # adjacency tile
            pl.BlockSpec((tk, fpi), lambda i, k: (k, 0)),         # neighbor feature tile
            pl.BlockSpec((tm, fpi), lambda i, k: (i, 0)),         # self-row features
            pl.BlockSpec((2 * fpi, fpo), lambda i, k: (0, 0)),    # fused [Wl; Wr]
            pl.BlockSpec((1, fpo), lambda i, k: (0, 0)),          # bias
        ],
        out_specs=pl.BlockSpec((tm, fpo), lambda i, k: (i, 0)),
        scratch_shapes=[pltpu.VMEM((tm, fpi), jnp.float32),       # agg accumulator
                        pltpu.VMEM((tm, 2 * fpi), x.dtype)],      # [agg | x] staging
        compiler_params=pltpu.CompilerParams(
            dimension_semantics=("parallel", "arbitrary"),
            vmem_limit_bytes=_vmem_limit_bytes(block_bytes, scratch_bytes)),
    )(adj, x, x, wcat, b)


def tree_gate(x_main, adj_tree, x, wt, bt, gw, gb, *, weight):
    npad, fpo = x_main.shape
    fpi = x.shape[1]
    lt = adj_tree.shape[0]
    tm = _pick_tile(npad, BLOCK_M)
    tk = _pick_tile(npad, BLOCK_K)
    esz = jnp.dtype(x.dtype).itemsize
    block_bytes = (tm * fpo * 4 + tm * tk * esz + tk * fpi * esz + tm * fpi * esz +
                   2 * fpi * fpo * esz + fpo * 4 + fpo * 4 + 4 + tm * fpo * 4)
    scratch_bytes = tm * fpi * 4 + tm * 2 * fpi * esz + 2 * tm * 4 + tm * fpo * 4
    kernel = functools.partial(tree_gate_kernel, fp_in=fpi, weight=float(weight))
    return pl.pallas_call(
        kernel,
        out_shape=jax.ShapeDtypeStruct((npad, fpo), jnp.float32),
        grid=(npad // tm, lt, npad // tk),
        in_specs=[
            pl.BlockSpec((tm, fpo), lambda i, l, k: (i, 0)),            # main-branch rows
            pl.BlockSpec((None, tm, tk), lambda i, l, k: (l, i, k)),    # tree adjacency tile
            pl.BlockSpec((tk, fpi), lambda i, l, k: (k, 0)),            # h neighbor tile
            pl.BlockSpec((tm, fpi), lambda i, l, k: (i, 0)),            # h self rows
            pl.BlockSpec((None, 2 * fpi, fpo), lambda i, l, k: (l, 0, 0)),  # fused tree weights
            pl.BlockSpec((None, 1, fpo), lambda i, l, k: (l, 0, 0)),    # tree conv biases
            pl.BlockSpec((None, 1, fpo), lambda i, l, k: (l, 0, 0)),    # gating weights
            pl.BlockSpec((None, 1, 1), lambda i, l, k: (l, 0, 0)),      # gating biases
        ],
        out_specs=pl.BlockSpec((tm, fpo), lambda i, l, k: (i, 0)),
        scratch_shapes=[
            pltpu.VMEM((tm, fpi), jnp.float32),     # agg accumulator
            pltpu.VMEM((tm, 2 * fpi), x.dtype),     # [agg | x] staging
            pltpu.VMEM((tm, 1), jnp.float32),       # running max
            pltpu.VMEM((tm, 1), jnp.float32),       # running denominator
            pltpu.VMEM((tm, fpo), jnp.float32),     # running weighted accumulator
        ],
        compiler_params=pltpu.CompilerParams(
            dimension_semantics=("parallel", "arbitrary", "arbitrary"),
            vmem_limit_bytes=_vmem_limit_bytes(block_bytes, scratch_bytes)),
    )(x_main, adj_tree, x, x, wt, bt, gw, gb)


# ------------------------------ plain-JAX glue ------------------------------ #

def build_mean_adj(edge_index, num_nodes):
    """Row-normalized adjacency: A[dst, src] = 1/deg(dst)  (PyG mean aggregation)."""
    src, dst = edge_index[0], edge_index[1]
    adj = jnp.zeros((num_nodes, num_nodes), jnp.float32).at[dst, src].add(1.0)
    deg = jnp.clip(jnp.sum(adj, axis=1, keepdims=True), 1.0, None)
    return adj / deg


def prepare_params(raw, in_feat, out_feat, num_layers, layers_tree):
    """Pad to 128 lanes, fuse [Wl; Wr], stack tree params, cast MXU inputs to bf16."""
    fpi = _round_up(in_feat, LANE)
    fpo = _round_up(out_feat, LANE)
    prepped = {"fpi": fpi, "fpo": fpo, "out_feat": out_feat, "convs": []}
    for i in range(num_layers):
        wl, wr, b = raw["convs"][i]
        fi_p = fpi if i == 0 else fpo
        wcat = jnp.concatenate(
            [_pad2(wl, (fi_p, fpo)), _pad2(wr, (fi_p, fpo))], axis=0)
        prepped["convs"].append(
            (wcat.astype(jnp.bfloat16), _pad2(b, (1, fpo)).astype(jnp.float32)))
    wts, bts, gws, gbs = [], [], [], []
    for i in range(layers_tree):
        wl, wr, b = raw["conv_tree"][i]
        wts.append(jnp.concatenate(
            [_pad2(wl, (fpi, fpo)), _pad2(wr, (fpi, fpo))], axis=0))
        bts.append(_pad2(b, (1, fpo)))
        gw, gb = raw["gating"][i]
        gws.append(jnp.pad(gw, (0, fpo - gw.shape[0]))[None, :])
        gbs.append(jnp.reshape(gb, (1, 1)))
    prepped["wt"] = jnp.stack(wts).astype(jnp.bfloat16)    # (L, 2*fpi, fpo)
    prepped["bt"] = jnp.stack(bts).astype(jnp.float32)     # (L, 1, fpo)
    prepped["gw"] = jnp.stack(gws).astype(jnp.float32)     # (L, 1, fpo)
    prepped["gb"] = jnp.stack(gbs).astype(jnp.float32)     # (L, 1, 1)
    return prepped


def layer_agg_forward(prepped, x, adj_main, adj_tree, *, weight,
                      num_layers, layers_tree):
    n = x.shape[0]
    fpi = prepped["fpi"]
    # Pad the node axis only to the lane width (128) — npad is the lane dim of
    # every adjacency block and the A bytes are the memory-bound term.
    npad = _round_up(n, LANE)

    # pad + bf16-cast once (XLA side); zero-padded rows/cols/lanes are inert
    x_p = _pad2(x, (npad, fpi)).astype(jnp.bfloat16)
    adj_main_p = _pad2(adj_main, (npad, npad)).astype(jnp.bfloat16)
    adj_tree_p = jnp.stack(
        [_pad2(a, (npad, npad)) for a in adj_tree]).astype(jnp.bfloat16)

    # main SAGE stack on edge_index[0]
    cur = x_p
    for i in range(num_layers):
        wcat, b = prepped["convs"][i]
        last = (i == num_layers - 1)
        cur = sage_conv(adj_main_p, cur, wcat, b,
                        apply_relu=not last,
                        out_dtype=jnp.float32 if last else jnp.bfloat16)
        # dropout: identity in eval mode

    # tree convs + online gated softmax + residual, fused in one kernel
    out_p = tree_gate(cur, adj_tree_p, x_p,
                      prepped["wt"], prepped["bt"],
                      prepped["gw"], prepped["gb"],
                      weight=weight)
    return out_p[:n, :prepped["out_feat"]]


def reference_forward(raw, x, adj_main, adj_tree, *, weight, num_layers, layers_tree):
    """Pure-JAX f32 reference of the PyTorch forward (eval mode)."""
    h = x
    cur = x
    for i in range(num_layers):
        wl, wr, b = raw["convs"][i]
        cur = (adj_main @ cur) @ wl + cur @ wr + b
        if i != num_layers - 1:
            cur = jnp.maximum(cur, 0.0)
    tree = []
    for i in range(layers_tree):
        wl, wr, b = raw["conv_tree"][i]
        tree.append(jnp.maximum((adj_tree[i] @ h) @ wl + h @ wr + b, 0.0))
    scores = jnp.stack([tree[i] @ raw["gating"][i][0] + raw["gating"][i][1]
                        for i in range(layers_tree)], axis=-1)        # (N, L)
    alpha = jax.nn.softmax(scores, axis=-1)
    x_tree = sum(tree[i] * alpha[:, i:i + 1] for i in range(layers_tree))
    return cur + weight * x_tree


# ---------------------------------- main ------------------------------------ #

if __name__ == "__main__":
    key = jax.random.PRNGKey(0)
    N = 64               # number of graph nodes
    IN_FEAT = 16
    OUT_FEAT = 32
    NUM_LAYERS = 2
    LAYERS_TREE = 2
    E = 256              # number of edges per graph
    WEIGHT = 1.0

    ks = jax.random.split(key, 32)
    x = jax.random.normal(ks[0], (N, IN_FEAT), jnp.float32)

    # edge_index[0] and edge_index[1][i] as random [2, E] int graphs
    ei_main = jax.random.randint(ks[1], (2, E), 0, N)
    ei_tree = [jax.random.randint(ks[2 + i], (2, E), 0, N) for i in range(LAYERS_TREE)]
    adj_main = build_mean_adj(ei_main, N)
    adj_tree = [build_mean_adj(e, N) for e in ei_tree]

    # deterministic synthetic parameters (not a checkpoint)
    def lin_w(k, fi, fo, scale=0.1):
        return scale * jax.random.normal(k, (fi, fo), jnp.float32)

    kidx = 10
    raw = {"convs": [], "conv_tree": [], "gating": []}
    for i in range(NUM_LAYERS):
        fi = IN_FEAT if i == 0 else OUT_FEAT
        wl = lin_w(ks[kidx], fi, OUT_FEAT); kidx += 1
        wr = lin_w(ks[kidx], fi, OUT_FEAT); kidx += 1
        b = 0.01 * jnp.ones((1, OUT_FEAT), jnp.float32)
        raw["convs"].append((wl, wr, b))
    for i in range(LAYERS_TREE):
        wl = lin_w(ks[kidx], IN_FEAT, OUT_FEAT); kidx += 1
        wr = lin_w(ks[kidx], IN_FEAT, OUT_FEAT); kidx += 1
        b = 0.01 * jnp.ones((1, OUT_FEAT), jnp.float32)
        raw["conv_tree"].append((wl, wr, b))
        gw = lin_w(ks[kidx], OUT_FEAT, 1)[:, 0]; kidx += 1   # (F_out,)
        gb = jnp.array(0.0, jnp.float32)
        raw["gating"].append((gw, gb))

    prepped = prepare_params(raw, IN_FEAT, OUT_FEAT, NUM_LAYERS, LAYERS_TREE)

    out = layer_agg_forward(prepped, x, adj_main, adj_tree, weight=WEIGHT,
                            num_layers=NUM_LAYERS, layers_tree=LAYERS_TREE)
    out = jax.block_until_ready(out)

    assert out.shape == (N, OUT_FEAT) and out.dtype == jnp.float32
    assert bool(jnp.all(jnp.isfinite(out)))

    # loose tolerance: bf16 MXU inputs + approx reciprocal vs f32 reference
    ref = reference_forward(raw, x, adj_main, adj_tree, weight=WEIGHT,
                            num_layers=NUM_LAYERS, layers_tree=LAYERS_TREE)
    assert float(jnp.max(jnp.abs(out - ref))) < 0.2
    print("KERNEL_OK")
</pallas_src>

<mosaic_0001>
module attributes {stable_mosaic.version = 11 : i64} {
  func.func @sage_conv_kernel(%arg0: i32, %arg1: i32, %arg2: memref<128x128xbf16, #tpu.memory_space<vmem>>, %arg3: memref<128x128xbf16, #tpu.memory_space<vmem>>, %arg4: memref<128x128xbf16, #tpu.memory_space<vmem>>, %arg5: memref<256x128xbf16, #tpu.memory_space<vmem>>, %arg6: memref<1x128xf32, #tpu.memory_space<vmem>>, %arg7: memref<128x128xbf16, #tpu.memory_space<vmem>>, %arg8: memref<128x128xf32, #tpu.memory_space<vmem>>, %arg9: memref<128x256xbf16, #tpu.memory_space<vmem>>) attributes {dimension_semantics = [#tpu.dimension_semantics<parallel>, #tpu.dimension_semantics<arbitrary>], iteration_bounds = array<i64: 1, 1>, scalar_prefetch = 0 : i64, scratch_operands = 2 : i64, tpu.core_type = #tpu.core_type<tc>, window_params = [{transform_indices = @transform_0, window_bounds = array<i64: 128, 128>}, {transform_indices = @transform_1, window_bounds = array<i64: 128, 128>}, {transform_indices = @transform_2, window_bounds = array<i64: 128, 128>}, {pipeline_mode = #tpu.pipeline_mode<synchronous>, transform_indices = @transform_3, window_bounds = array<i64: 256, 128>}, {pipeline_mode = #tpu.pipeline_mode<synchronous>, transform_indices = @transform_4, window_bounds = array<i64: 1, 128>}, {transform_indices = @transform_5, window_bounds = array<i64: 128, 128>}]} {
    %c0_i32 = arith.constant 0 : i32
    %0 = arith.cmpi eq, %arg1, %c0_i32 : i32
    %1 = arith.extui %0 : i1 to i32
    %c0_i32_0 = arith.constant 0 : i32
    %2 = arith.cmpi ne, %1, %c0_i32_0 : i32
    scf.if %2 {
      %cst_10 = arith.constant 0.000000e+00 : f32
      %12 = vector.broadcast %cst_10 : f32 to vector<128x128xf32>
      %c0_11 = arith.constant 0 : index
      %c0_12 = arith.constant 0 : index
      %13 = vector.load %arg8[%c0_11, %c0_12] : memref<128x128xf32, #tpu.memory_space<vmem>>, vector<128x128xf32>
      tpu.vector_store %arg8[%c0_11, %c0_12], %12 {strides = array<i32>} : memref<128x128xf32, #tpu.memory_space<vmem>>, vector<128x128xf32>,
    } else {
    }
    %c0 = arith.constant 0 : index
    %c0_1 = arith.constant 0 : index
    %3 = vector.load %arg8[%c0, %c0_1] : memref<128x128xf32, #tpu.memory_space<vmem>>, vector<128x128xf32>
    %c0_2 = arith.constant 0 : index
    %c0_3 = arith.constant 0 : index
    %4 = vector.load %arg2[%c0_2, %c0_3] : memref<128x128xbf16, #tpu.memory_space<vmem>>, vector<128x128xbf16>
    %c0_4 = arith.constant 0 : index
    %c0_5 = arith.constant 0 : index
    %5 = vector.load %arg3[%c0_4, %c0_5] : memref<128x128xbf16, #tpu.memory_space<vmem>>, vector<128x128xbf16>
    %cst = arith.constant dense<0.000000e+00> : vector<128x128xf32>
    %6 = tpu.matmul %4, %5, %cst {dimension_numbers = #tpu.dot_dimension_numbers<[1], [0], [0], [1], [0, 0, 1, 1], [], []>} : vector<128x128xbf16>, vector<128x128xbf16>, vector<128x128xf32> -> vector<128x128xf32>
    %7 = arith.addf %3, %6 : vector<128x128xf32>
    %c0_6 = arith.constant 0 : index
    %c0_7 = arith.constant 0 : index
    %8 = vector.load %arg8[%c0_6, %c0_7] : memref<128x128xf32, #tpu.memory_space<vmem>>, vector<128x128xf32>
    tpu.vector_store %arg8[%c0_6, %c0_7], %7 {strides = array<i32>} : memref<128x128xf32, #tpu.memory_space<vmem>>, vector<128x128xf32>,
    %c0_i32_8 = arith.constant 0 : i32
    %9 = arith.cmpi eq, %arg1, %c0_i32_8 : i32
    %10 = arith.extui %9 : i1 to i32
    %c0_i32_9 = arith.constant 0 : i32
    %11 = arith.cmpi ne, %10, %c0_i32_9 : i32
    scf.if %11 {
      %c0_10 = arith.constant 0 : index
      %c0_11 = arith.constant 0 : index
      %12 = vector.load %arg8[%c0_10, %c0_11] : memref<128x128xf32, #tpu.memory_space<vmem>>, vector<128x128xf32>
      %13 = arith.truncf %12 : vector<128x128xf32> to vector<128x128xbf16>
      %c0_12 = arith.constant 0 : index
      %c0_13 = arith.constant 0 : index
      %14 = vector.load %arg9[%c0_12, %c0_13] : memref<128x256xbf16, #tpu.memory_space<vmem>>, vector<128x128xbf16>
      tpu.vector_store %arg9[%c0_12, %c0_13], %13 {strides = array<i32>} : memref<128x256xbf16, #tpu.memory_space<vmem>>, vector<128x128xbf16>,
      %c0_14 = arith.constant 0 : index
      %c0_15 = arith.constant 0 : index
      %15 = vector.load %arg4[%c0_14, %c0_15] : memref<128x128xbf16, #tpu.memory_space<vmem>>, vector<128x128xbf16>
      %c0_16 = arith.constant 0 : index
      %c128 = arith.constant 128 : index
      %16 = vector.load %arg9[%c0_16, %c128] : memref<128x256xbf16, #tpu.memory_space<vmem>>, vector<128x128xbf16>
      tpu.vector_store %arg9[%c0_16, %c128], %15 {strides = array<i32>} : memref<128x256xbf16, #tpu.memory_space<vmem>>, vector<128x128xbf16>,
      %c0_17 = arith.constant 0 : index
      %c0_18 = arith.constant 0 : index
      %17 = vector.load %arg9[%c0_17, %c0_18] : memref<128x256xbf16, #tpu.memory_space<vmem>>, vector<128x256xbf16>
      %c0_19 = arith.constant 0 : index
      %c0_20 = arith.constant 0 : index
      %18 = vector.load %arg5[%c0_19, %c0_20] : memref<256x128xbf16, #tpu.memory_space<vmem>>, vector<256x128xbf16>
      %cst_21 = arith.constant dense<0.000000e+00> : vector<128x128xf32>
      %19 = tpu.matmul %17, %18, %cst_21 {dimension_numbers = #tpu.dot_dimension_numbers<[1], [0], [0], [1], [0, 0, 1, 1], [], []>} : vector<128x256xbf16>, vector<256x128xbf16>, vector<128x128xf32> -> vector<128x128xf32>
      %c0_22 = arith.constant 0 : index
      %c0_23 = arith.constant 0 : index
      %20 = vector.load %arg6[%c0_22, %c0_23] : memref<1x128xf32, #tpu.memory_space<vmem>>, vector<1x128xf32>
      %21 = vector.broadcast %20 : vector<1x128xf32> to vector<128x128xf32>
      %22 = arith.addf %19, %21 : vector<128x128xf32>
      %cst_24 = arith.constant 0.000000e+00 : f32
      %23 = vector.broadcast %cst_24 : f32 to vector<128x128xf32>
      %24 = arith.maximumf %22, %23 : vector<128x128xf32>
      %25 = arith.truncf %24 : vector<128x128xf32> to vector<128x128xbf16>
      %c0_25 = arith.constant 0 : index
      %c0_26 = arith.constant 0 : index
      %26 = vector.load %arg7[%c0_25, %c0_26] : memref<128x128xbf16, #tpu.memory_space<vmem>>, vector<128x128xbf16>
      tpu.vector_store %arg7[%c0_25, %c0_26], %25 {strides = array<i32>} : memref<128x128xbf16, #tpu.memory_space<vmem>>, vector<128x128xbf16>,
    } else {
    }
    return
  }
  func.func @transform_0(%arg0: i32, %arg1: i32) -> (i32, i32) {
    %c0_i32 = arith.constant 0 : i32
    return %arg0, %arg1 : i32, i32
  }
  func.func @transform_1(%arg0: i32, %arg1: i32) -> (i32, i32) {
    %c0_i32 = arith.constant 0 : i32
    %c0_i32_0 = arith.constant 0 : i32
    return %arg1, %c0_i32 : i32, i32
  }
  func.func @transform_2(%arg0: i32, %arg1: i32) -> (i32, i32) {
    %c0_i32 = arith.constant 0 : i32
    %c0_i32_0 = arith.constant 0 : i32
    return %arg0, %c0_i32 : i32, i32
  }
  func.func @transform_3(%arg0: i32, %arg1: i32) -> (i32, i32) {
    %c0_i32 = arith.constant 0 : i32
    %c0_i32_0 = arith.constant 0 : i32
    %c0_i32_1 = arith.constant 0 : i32
    return %c0_i32, %c0_i32_0 : i32, i32
  }
  func.func @transform_4(%arg0: i32, %arg1: i32) -> (i32, i32) {
    %c0_i32 = arith.constant 0 : i32
    %c0_i32_0 = arith.constant 0 : i32
    %c0_i32_1 = arith.constant 0 : i32
    return %c0_i32, %c0_i32_0 : i32, i32
  }
  func.func @transform_5(%arg0: i32, %arg1: i32) -> (i32, i32) {
    %c0_i32 = arith.constant 0 : i32
    %c0_i32_0 = arith.constant 0 : i32
    return %arg0, %c0_i32 : i32, i32
  }
}

</mosaic_0001>

<bundles_post_ra>
// kernel: tpu_custom_call.1
= control target key start
LH: loop header
LB: loop body
LE: loop exit
PB: predicated region body
PF: predicated region fallthrough
CT: control target
= control target key end

     0   :  { %10 = vsyncpa [#allocation5], 0  ;;  %s1400_s0 = inlined_call_operand.hbm [shape: bf16[128,128], index: 0, kind: input, shape index: {}]   ;;  %s1401_s1 = inlined_call_operand.hbm [shape: bf16[128,128], index: 1, kind: input, shape index: {}]   ;;  %s1402_s2 = inlined_call_operand.hbm [shape: bf16[128,128], index: 2, kind: input, shape index: {}]   ;;  %s1403_s3 = inlined_call_operand.hbm [shape: bf16[256,128], index: 3, kind: input, shape index: {}]   ;;  %s1404_s4 = inlined_call_operand.vmem [shape: f32[1,128], index: 4, kind: input, shape index: {}]   ;;  %s1405_s5 = inlined_call_operand.hbm [shape: bf16[128,128], index: 5, kind: output, shape index: {}]  }
   0x1   :  { %11 = vsyncpa [#allocation8], 0 }
   0x2   :  { %12 = vsyncpa [#allocation11], 0 }
   0x3   :  { %13 = vsyncpa [#allocation6], 0  ;;  %s1253_s18 = smov [#allocation7]   ;;  %s1254_s20 = smov [#allocation4]  }
   0x4   :  { %s31_s19 = sshll.u32 %s1253_s18, 4  ;;  %s19_s21 = sshll.u32 %s1254_s20, 4  ;;  %s32_s19 = int_to_ptr.vmem [resolvable:$true] %s31_s19  ;;  %s1290_s21 = int_to_ptr.vmem [resolvable:$true] %s19_s21 }
   0x5   :  { %s1135_s24 = scalar_lea.hbm %s1401_s1, 1024 }
   0x6   :  { %p1136_p0 = scmp.ne.s32.totalorder %s1401_s1, %s1135_s24  ;;  %p1139_p1 = scmp.lt.u32.totalorder %s1135_s24, %s1401_s1 }
   0x8   :  { %p1141_p2 = pnand %p1139_p1, %p1136_p0 }
   0xa   :  { %1144 = shalt.err (!%p1141_p2)
}
   0xb   :  { %s1145_s29 = scalar_lea.vmem %s32_s19, 1024  ;;  %p1150_p4 = scmp.lt.s32.totalorder %s32_s19, %s32_s19 }
   0xc   :  { %p1146_p3 = scmp.ne.s32.totalorder %s32_s19, %s1145_s29  ;;  %p1151_p5 = scmp.lt.s32.totalorder %s1145_s29, %s1145_s29 }
   0xe   :  { %p1152_p6 = por %p1151_p5, %p1150_p4 }
  0x10   :  { %p1153_p7 = pnand %p1152_p6, %p1146_p3 }
  0x12   :  { %1156 = shalt.err (!%p1153_p7)
}
  0x13   :  { %s1255_s30 = smov 64   ;;  %s1256_s6 = smov 4  }
  0x14   :  { %37 = dma.hbm_to_vmem [thread:$0]  %s1401_s1, 1024, %s32_s19, [#allocation8], %s1255_s30, %s1255_s30, %s1256_s6  }
  0x15   :  { %s1157_s11 = scalar_lea.hbm %s1400_s0, 1024 }
  0x16   :  { %p1158_p8 = scmp.ne.s32.totalorder %s1400_s0, %s1157_s11  ;;  %p1161_p9 = scmp.lt.u32.totalorder %s1157_s11, %s1400_s0 }
  0x18   :  { %p1163_p10 = pnand %p1161_p9, %p1158_p8 }
  0x1a   :  { %1166 = shalt.err (!%p1163_p10)
}
  0x1b   :  { %s1167_s16 = scalar_lea.vmem %s1290_s21, 1024  ;;  %p1172_p12 = scmp.lt.s32.totalorder %s1290_s21, %s1290_s21 }
  0x1c   :  { %p1168_p11 = scmp.ne.s32.totalorder %s1290_s21, %s1167_s16  ;;  %p1173_p13 = scmp.lt.s32.totalorder %s1167_s16, %s1167_s16 }
  0x1e   :  { %p1174_p0 = por %p1173_p13, %p1172_p12 }
  0x20   :  { %p1175_p1 = pnand %p1174_p0, %p1168_p11 }
  0x22   :  { %1178 = shalt.err (!%p1175_p1)
}
  0x23   :  { %25 = dma.hbm_to_vmem [thread:$0]  %s1400_s0, 1024, %s1290_s21, [#allocation5], %s1255_s30, %s1255_s30, %s1256_s6  }
  0x24   :  { %s1257_s18 = smov [#allocation9]   ;;  %s1258_s20 = smov [#allocation10]  }
  0x25   :  { %s43_s19 = sshll.u32 %s1257_s18, 4  ;;  %s55_s22 = sshll.u32 %s1258_s20, 4  ;;  %s44_s19 = int_to_ptr.vmem [resolvable:$true] %s43_s19  ;;  %s1327_s22 = int_to_ptr.vmem [resolvable:$true] %s55_s22 }
  0x26   :  { %s1179_s25 = scalar_lea.hbm %s1402_s2, 1024 }
  0x27   :  { %p1180_p2 = scmp.ne.s32.totalorder %s1402_s2, %s1179_s25  ;;  %p1183_p3 = scmp.lt.u32.totalorder %s1179_s25, %s1402_s2 }
  0x29   :  { %p1185_p4 = pnand %p1183_p3, %p1180_p2 }
  0x2b   :  { %1188 = shalt.err (!%p1185_p4)
}
  0x2c   :  { %s1189_s0 = scalar_lea.vmem %s44_s19, 1024  ;;  %p1194_p6 = scmp.lt.s32.totalorder %s44_s19, %s44_s19 }
  0x2d   :  { %p1190_p5 = scmp.ne.s32.totalorder %s44_s19, %s1189_s0  ;;  %p1195_p7 = scmp.lt.s32.totalorder %s1189_s0, %s1189_s0 }
  0x2f   :  { %p1196_p8 = por %p1195_p7, %p1194_p6 }
  0x31   :  { %p1197_p9 = pnand %p1196_p8, %p1190_p5 }
  0x33   :  { %1200 = shalt.err (!%p1197_p9)
}
  0x34   :  { %49 = dma.hbm_to_vmem [thread:$0]  %s1402_s2, 1024, %s44_s19, [#allocation8], %s1255_s30, %s1255_s30, %s1256_s6  }
  0x35   :  { %s1201_s10 = scalar_lea.hbm %s1403_s3, 2048 }
  0x36   :  { %p1202_p10 = scmp.ne.s32.totalorder %s1403_s3, %s1201_s10  ;;  %p1205_p11 = scmp.lt.u32.totalorder %s1201_s10, %s1403_s3 }
  0x38   :  { %p1207_p12 = pnand %p1205_p11, %p1202_p10 }
  0x3a   :  { %1210 = shalt.err (!%p1207_p12)
}
  0x3b   :  { %s1211_s15 = scalar_lea.vmem %s1327_s22, 2048  ;;  %p1216_p0 = scmp.lt.s32.totalorder %s1327_s22, %s1327_s22 }
  0x3c   :  { %p1212_p13 = scmp.ne.s32.totalorder %s1327_s22, %s1211_s15  ;;  %p1217_p1 = scmp.lt.s32.totalorder %s1211_s15, %s1211_s15 }
  0x3e   :  { %p1218_p2 = por %p1217_p1, %p1216_p0 }
  0x40   :  { %p1219_p3 = pnand %p1218_p2, %p1212_p13 }
  0x42   :  { %1222 = shalt.err (!%p1219_p3)
}
  0x43   :  { %61 = dma.hbm_to_vmem [thread:$0]  %s1403_s3, 2048, %s1327_s22, [#allocation11], %s1255_s30, %s1255_s30, %s1256_s6  }
  0x44   :  { %1245 = dma.done.wait [#allocation5], 1024  }
  0x45   :  { %1246 = vsyncadd [#allocation5], 4294966272 }
  0x46   :  { %1247 = dma.done.wait [#allocation8], 2048  }
  0x47   :  { %1248 = vsyncadd [#allocation8], 4294965248 }
  0x48   :  { %1249 = dma.done.wait [#allocation11], 2048  }
  0x49   :  { %1250 = vsyncadd [#allocation11], 4294965248  ;;  %v1095_v0 = vld [vmem:[#allocation7] sm:$0xff]   ;;  %v1096_v1 = vld [vmem:[#allocation7 + $0x8] sm:$0xff]  }
  0x4a   :  { %1040 = vmatprep.subr.bf16.mxu0 %v1095_v0  ;;  %v1097_v2 = vld [vmem:[#allocation7 + $0x10] sm:$0xff]   ;;  %v1098_v3 = vld [vmem:[#allocation7 + $0x18] sm:$0xff]   ;;  %v1103_v4 = vld [vmem:[#allocation4] sm:$0xff]  }
  0x4b   :  { %1041 = vmatpush3.bf16.msra.mxu0 %v1095_v0  ;;  %1056 = vmatprep.mubr.bf16.mxu0 %v1103_v4  ;;  %v1099_v5 = vld [vmem:[#allocation7 + $0x20] sm:$0xff]   ;;  %v1100_v6 = vld [vmem:[#allocation7 + $0x28] sm:$0xff]   ;;  %v1101_v10 = vld [vmem:[#allocation7 + $0x30] sm:$0xff]  }
  0x4c   :  { %1042 = vmatprep.subr.bf16.mxu0 %v1096_v1  ;;  %v1111_v7 = vld [vmem:[#allocation10 + $0x40] sm:$0xff]   ;;  %v1113_v9 = vld [vmem:[#allocation10 + $0x48] sm:$0xff]   ;;  %v1115_v12 = vld [vmem:[#allocation10 + $0x50] sm:$0xff]  }
  0x4d   :  { %v1112_v8 = vld [vmem:[#allocation10] sm:$0xff]   ;;  %1072 = vmatprep.subr.bf16.mxu1 %v1111_v7  ;;  %v1114_v11 = vld [vmem:[#allocation10 + $0x8] sm:$0xff]   ;;  %v1102_v13 = vld [vmem:[#allocation7 + $0x38] sm:$0xff]  }
  0x4e   :  { %1080 = vmatpush3.bf16.msra.mxu1 %v1112_v8  ;;  %v1116_v14 = vld [vmem:[#allocation10 + $0x10] sm:$0xff]   ;;  %v1117_v15 = vld [vmem:[#allocation10 + $0x58] sm:$0xff]   ;;  %v1104_v16 = vld [vmem:[#allocation4 + $0x8] sm:$0xff]  }
  0x4f   :  { %1043 = vmatpush3.bf16.msra.mxu0 %v1096_v1  ;;  %1073 = vmatprep.subr.bf16.mxu1 %v1113_v9  ;;  %v1118_v17 = vld [vmem:[#allocation10 + $0x18] sm:$0xff]   ;;  %v1105_v18 = vld [vmem:[#allocation4 + $0x10] sm:$0xff]   ;;  %v1119_v19 = vld [vmem:[#allocation10 + $0x60] sm:$0xff]  }
  0x50   :  { %1044 = vmatprep.subr.bf16.mxu0 %v1097_v2  ;;  %v1120_v20 = vld [vmem:[#allocation10 + $0x20] sm:$0xff]   ;;  %v1121_v21 = vld [vmem:[#allocation10 + $0x68] sm:$0xff]   ;;  %v1106_v22 = vld [vmem:[#allocation4 + $0x18] sm:$0xff]  }
  0x51   :  { %v1122_v23 = vld [vmem:[#allocation10 + $0x28] sm:$0xff]   ;;  %v1107_v24 = vld [vmem:[#allocation4 + $0x20] sm:$0xff]   ;;  %v1123_v25 = vld [vmem:[#allocation10 + $0x70] sm:$0xff]  }
  0x52   :  { %1081 = vmatpush3.bf16.msra.mxu1 %v1114_v11  ;;  %v1124_v26 = vld [vmem:[#allocation10 + $0x30] sm:$0xff]   ;;  %v1108_v27 = vld [vmem:[#allocation4 + $0x28] sm:$0xff]   ;;  %v1110_v29 = vld [vmem:[#allocation4 + $0x38] sm:$0xff]  }
  0x53   :  { %1045 = vmatpush3.bf16.msra.mxu0 %v1097_v2  ;;  %1074 = vmatprep.subr.bf16.mxu1 %v1115_v12  ;;  %v1109_v28 = vld [vmem:[#allocation4 + $0x30] sm:$0xff]   ;;  %v1125_v30 = vld [vmem:[#allocation10 + $0x78] sm:$0xff]   ;;  %v1127_v32 = vld [vmem:[#allocation9] sm:$0xff]  }
  0x54   :  { %1046 = vmatprep.subr.bf16.mxu0 %v1098_v3  ;;  %v1126_v31 = vld [vmem:[#allocation10 + $0x38] sm:$0xff]   ;;  %v1129_v33 = vld [vmem:[#allocation9 + $0x10] sm:$0xff]   ;;  %v1128_v39 = vld [vmem:[#allocation9 + $0x8] sm:$0xff]  }
  0x55   :  { %676 = vmatprep.mubr.bf16.mxu1 %v1129_v33  ;;  %v1130_v46 = vld [vmem:[#allocation9 + $0x18] sm:$0xff]   ;;  %v1131_v53 = vld [vmem:[#allocation9 + $0x20] sm:$0xff]   ;;  %v1132_v58 = vld [vmem:[#allocation9 + $0x28] sm:$0xff]  }
  0x56   :  { %1082 = vmatpush3.bf16.msra.mxu1 %v1116_v14  ;;  %v1133_v62 = vld [vmem:[#allocation9 + $0x30] sm:$0xff]   ;;  %v1134_v63 = vld [vmem:[#allocation9 + $0x38] sm:$0xff]   ;;  %v1367_v1 = vld [vmem:[%s1404_s4] ss:$0 sm:$0xff]  ;;  %s1259_s4 = smov [#allocation12]  }
  0x57   :  { %1047 = vmatpush3.bf16.msra.mxu0 %v1098_v3  ;;  %1075 = vmatprep.subr.bf16.mxu1 %v1117_v15  ;;  %s826_s17 = sshll.u32 %s1259_s4, 4  ;;  %s827_s17 = int_to_ptr.vmem [resolvable:$true] %s826_s17 }
  0x58   :  { %1048 = vmatprep.subr.bf16.mxu0 %v1099_v5  ;;  %s1223_s18 = scalar_lea.vmem %s827_s17, 1024  ;;  %p1228_p5 = scmp.lt.s32.totalorder %s827_s17, %s827_s17 }
  0x59   :  { %p1224_p4 = scmp.ne.s32.totalorder %s827_s17, %s1223_s18  ;;  %p1229_p6 = scmp.lt.s32.totalorder %s1223_s18, %s1223_s18 }
  0x5a   :  { %1083 = vmatpush3.bf16.msra.mxu1 %v1118_v17 }
  0x5b   :  { %1049 = vmatpush3.bf16.msra.mxu0 %v1099_v5  ;;  %1076 = vmatprep.subr.bf16.mxu1 %v1119_v19  ;;  %p1230_p7 = por %p1229_p6, %p1228_p5 }
  0x5c   :  { %1050 = vmatprep.subr.bf16.mxu0 %v1100_v6 }
  0x5d   :  { %p1231_p8 = pnand %p1230_p7, %p1224_p4 }
  0x5e   :  { %1084 = vmatpush3.bf16.msra.mxu1 %v1120_v20 }
  0x5f   :  { %1051 = vmatpush3.bf16.msra.mxu0 %v1100_v6  ;;  %1077 = vmatprep.subr.bf16.mxu1 %v1121_v21 }
  0x60   :  { %1052 = vmatprep.subr.bf16.mxu0 %v1101_v10 }
  0x62   :  { %1085 = vmatpush3.bf16.msra.mxu1 %v1122_v23 }
  0x63   :  { %1053 = vmatpush3.bf16.msra.mxu0 %v1101_v10  ;;  %1078 = vmatprep.subr.bf16.mxu1 %v1123_v25 }
  0x64   :  { %1054 = vmatprep.subr.bf16.mxu0 %v1102_v13 }
  0x66   :  { %1086 = vmatpush3.bf16.msra.mxu1 %v1124_v26 }
  0x67   :  { %1055 = vmatpush3.bf16.msra.mxu0 %v1102_v13  ;;  %1079 = vmatprep.subr.bf16.mxu1 %v1125_v30 }
  0x68   :  { %976 = vmatprep.subr.bf16.mxu0 %v1111_v7 }
  0x6a   :  { %1057 = vmatmul.mubr.bf16.vlgmr.msra.gmra.mrb[0].mxu0 %v1104_v16  ;;  %1087 = vmatpush3.bf16.msra.mxu1 %v1126_v31 }
  0x6b   :  { %1060 = vmatprep.mubr.bf16.mxu0 %v1105_v18  ;;  %977 = vmatpush3.bf16.msra.mxu0 %v1112_v8 }
  0x6c   :  { %978 = vmatprep.subr.bf16.mxu0 %v1113_v9 }
  0x6f   :  { %979 = vmatpush3.bf16.msra.mxu0 %v1114_v11 }
  0x70   :  { %980 = vmatprep.subr.bf16.mxu0 %v1115_v12 }
  0x72   :  { %1061 = vmatmul.mubr.bf16.gmra.mrb[4].mxu0 %v1106_v22 }
  0x73   :  { %1064 = vmatprep.mubr.bf16.mxu0 %v1107_v24  ;;  %981 = vmatpush3.bf16.msra.mxu0 %v1116_v14 }
  0x74   :  { %982 = vmatprep.subr.bf16.mxu0 %v1117_v15 }
  0x77   :  { %983 = vmatpush3.bf16.msra.mxu0 %v1118_v17 }
  0x78   :  { %984 = vmatprep.subr.bf16.mxu0 %v1119_v19 }
  0x7a   :  { %1065 = vmatmul.mubr.bf16.gmra.mrb[8].mxu0 %v1108_v27 }
  0x7b   :  { %1068 = vmatprep.mubr.bf16.mxu0 %v1109_v28  ;;  %985 = vmatpush3.bf16.msra.mxu0 %v1120_v20 }
  0x7c   :  { %986 = vmatprep.subr.bf16.mxu0 %v1121_v21 }
  0x7f   :  { %987 = vmatpush3.bf16.msra.mxu0 %v1122_v23 }
  0x80   :  { %988 = vmatprep.subr.bf16.mxu0 %v1123_v25 }
  0x82   :  { %1069 = vmatmul.mubr.bf16.gmra.mrb[12].mxu0 %v1110_v29 }
  0x83   :  { %989 = vmatpush3.bf16.msra.mxu0 %v1124_v26  ;;  %660 = vmatprep.mubr.bf16.mxu0 %v1127_v32 }
  0x84   :  { %990 = vmatprep.subr.bf16.mxu0 %v1125_v30 }
  0x87   :  { %991 = vmatpush3.bf16.msra.mxu0 %v1126_v31 }
 0x13d   :  { %v1058_v34 = vpop.f32.mrb[0].mxu0 }
 0x13e   :  { %v275_v35 = vpop.f32.mrb[1].mxu0 }
 0x13f   :  { %v1059_v36 = vpop.f32.mrb[2].mxu0 }
 0x140   :  { %v390_v37 = vpack.c.bf16 %v1059_v36, %v1058_v34  ;;  %v278_v38 = vpop.f32.mrb[3].mxu0 }
 0x141   :  { %v389_v40 = vpack.c.bf16 %v278_v38, %v275_v35 }
 0x143   :  { %661 = vmatmul.mubr.bf16.vlgmr.msra.gmra.mrb[16].mxu0 %v389_v40 }
 0x144   :  { %668 = vmatprep.mubr.bf16.mxu0 %v1128_v39 }
 0x145   :  { %v1062_v41 = vpop.f32.mrb[4].mxu0 }
 0x146   :  { %v291_v42 = vpop.f32.mrb[5].mxu0 }
 0x147   :  { %v1063_v43 = vpop.f32.mrb[6].mxu0 }
 0x148   :  { %v392_v44 = vpack.c.bf16 %v1063_v43, %v1062_v41  ;;  %v294_v45 = vpop.f32.mrb[7].mxu0 }
 0x149   :  { %v391_v47 = vpack.c.bf16 %v294_v45, %v291_v42 }
 0x14b   :  { %669 = vmatmul.mubr.bf16.gmra.mrb[20].mxu0 %v390_v37  ;;  %677 = vmatmul.mubr.bf16.vlgmr.msra.gmra.mrb[0].mxu1 %v391_v47 }
 0x14c   :  { %684 = vmatprep.mubr.bf16.mxu1 %v1130_v46 }
 0x14d   :  { %v1066_v48 = vpop.f32.mrb[8].mxu0 }
 0x14e   :  { %v307_v49 = vpop.f32.mrb[9].mxu0 }
 0x14f   :  { %v1067_v50 = vpop.f32.mrb[10].mxu0 }
 0x150   :  { %v394_v51 = vpack.c.bf16 %v1067_v50, %v1066_v48  ;;  %v310_v52 = vpop.f32.mrb[11].mxu0 }
 0x151   :  { %v393_v54 = vpack.c.bf16 %v310_v52, %v307_v49 }
 0x153   :  { %685 = vmatmul.mubr.bf16.gmra.mrb[4].mxu1 %v392_v44 }
 0x154   :  { %692 = vmatprep.mubr.bf16.mxu1 %v1131_v53 }
 0x155   :  { %v1070_v55 = vpop.f32.mrb[12].mxu0 }
 0x156   :  { %v323_v56 = vpop.f32.mrb[13].mxu0 }
 0x157   :  { %v1071_v57 = vpop.f32.mrb[14].mxu0 }
 0x158   :  { %v396_v59 = vpack.c.bf16 %v1071_v57, %v1070_v55  ;;  %v326_v60 = vpop.f32.mrb[15].mxu0 }
 0x159   :  { %v395_v61 = vpack.c.bf16 %v326_v60, %v323_v56 }
 0x15b   :  { %693 = vmatmul.mubr.bf16.gmra.mrb[8].mxu1 %v393_v54 }
 0x15c   :  { %700 = vmatprep.mubr.bf16.mxu1 %v1132_v58 }
 0x163   :  { %701 = vmatmul.mubr.bf16.gmra.mrb[12].mxu1 %v394_v51 }
 0x164   :  { %708 = vmatprep.mubr.bf16.mxu1 %v1133_v62 }
 0x16b   :  { %709 = vmatmul.mubr.bf16.gmra.mrb[16].mxu1 %v395_v61 }
 0x16c   :  { %716 = vmatprep.mubr.bf16.mxu1 %v1134_v63 }
 0x173   :  { %717 = vmatmul.mubr.bf16.gmra.mrb[20].mxu1 %v396_v59 }
 0x216   :  { %v992_v0 = vpop.f32.mrb[16].mxu0 }
 0x217   :  { %v993_v2 = vpop.f32.mrb[17].mxu0 }
 0x218   :  { %v994_v3 = vadd.f32 %v993_v2, %v992_v0  ;;  %v995_v4 = vpop.f32.mrb[18].mxu0 }
 0x219   :  { %v996_v5 = vpop.f32.mrb[19].mxu0 }
 0x21a   :  { %v663_v6 = vadd.f32 %v994_v3, %v1367_v1  ;;  %v997_v7 = vadd.f32 %v996_v5, %v995_v4 }
 0x21c   :  { %v666_v8 = vadd.f32 %v997_v7, %v1367_v1  ;;  %v725_v9 = vmax.f32 %v663_v6, 0.0 }
 0x21e   :  { %v726_v10 = vmax.f32 %v666_v8, 0.0  ;;  %v998_v11 = vpop.f32.mrb[20].mxu0  ;;  %v1004_v12 = vpop.f32.mrb[0].mxu1 }
 0x21f   :  { %v999_v13 = vpop.f32.mrb[21].mxu0  ;;  %v1005_v14 = vpop.f32.mrb[1].mxu1 }
 0x220   :  { %v916_v15 = vpack.c.bf16 %v726_v10, %v725_v9  ;;  %v1000_v16 = vadd.f32 %v999_v13, %v998_v11  ;;  %v1006_v17 = vadd.f32 %v1005_v14, %v1004_v12  ;;  %v1001_v18 = vpop.f32.mrb[22].mxu0  ;;  %v1007_v19 = vpop.f32.mrb[2].mxu1 }
 0x221   :  { %v1002_v20 = vpop.f32.mrb[23].mxu0  ;;  %v1008_v21 = vpop.f32.mrb[3].mxu1 }
 0x222   :  { %917 = vst [vmem:[#allocation12] sm:$0xff] %v916_v15   ;;  %v671_v22 = vadd.f32 %v1000_v16, %v1367_v1  ;;  %v679_v23 = vadd.f32 %v1006_v17, %v1367_v1  ;;  %v1003_v24 = vadd.f32 %v1002_v20, %v1001_v18  ;;  %v1009_v25 = vadd.f32 %v1008_v21, %v1007_v19 }
 0x224   :  { %v674_v26 = vadd.f32 %v1003_v24, %v1367_v1  ;;  %v682_v27 = vadd.f32 %v1009_v25, %v1367_v1  ;;  %v727_v28 = vmax.f32 %v671_v22, 0.0  ;;  %v729_v29 = vmax.f32 %v679_v23, 0.0 }
 0x226   :  { %v728_v30 = vmax.f32 %v674_v26, 0.0  ;;  %v730_v31 = vmax.f32 %v682_v27, 0.0  ;;  %v1010_v32 = vpop.f32.mrb[4].mxu1 }
 0x227   :  { %v1011_v33 = vpop.f32.mrb[5].mxu1 }
 0x228   :  { %v921_v34 = vpack.c.bf16 %v728_v30, %v727_v28  ;;  %v926_v35 = vpack.c.bf16 %v730_v31, %v729_v29  ;;  %v1012_v36 = vadd.f32 %v1011_v33, %v1010_v32  ;;  %v1013_v37 = vpop.f32.mrb[6].mxu1 }
 0x229   :  { %v1014_v38 = vpop.f32.mrb[7].mxu1 }
 0x22a   :  { %953 = vst [vmem:[#allocation12 + $0x8] sm:$0xff] %v921_v34   ;;  %954 = vst [vmem:[#allocation12 + $0x10] sm:$0xff] %v926_v35   ;;  %v687_v39 = vadd.f32 %v1012_v36, %v1367_v1  ;;  %v1015_v40 = vadd.f32 %v1014_v38, %v1013_v37 }
 0x22c   :  { %v690_v41 = vadd.f32 %v1015_v40, %v1367_v1  ;;  %v731_v42 = vmax.f32 %v687_v39, 0.0 }
 0x22e   :  { %v732_v43 = vmax.f32 %v690_v41, 0.0  ;;  %v1016_v44 = vpop.f32.mrb[8].mxu1 }
 0x22f   :  { %v1017_v45 = vpop.f32.mrb[9].mxu1 }
 0x230   :  { %v931_v46 = vpack.c.bf16 %v732_v43, %v731_v42  ;;  %v1018_v47 = vadd.f32 %v1017_v45, %v1016_v44  ;;  %v1019_v48 = vpop.f32.mrb[10].mxu1 }
 0x231   :  { %v1020_v49 = vpop.f32.mrb[11].mxu1 }
 0x232   :  { %955 = vst [vmem:[#allocation12 + $0x18] sm:$0xff] %v931_v46   ;;  %v695_v50 = vadd.f32 %v1018_v47, %v1367_v1  ;;  %v1021_v51 = vadd.f32 %v1020_v49, %v1019_v48 }
 0x234   :  { %v698_v52 = vadd.f32 %v1021_v51, %v1367_v1  ;;  %v733_v53 = vmax.f32 %v695_v50, 0.0 }
 0x236   :  { %v734_v54 = vmax.f32 %v698_v52, 0.0  ;;  %v1022_v55 = vpop.f32.mrb[12].mxu1 }
 0x237   :  { %v1023_v56 = vpop.f32.mrb[13].mxu1 }
 0x238   :  { %v936_v57 = vpack.c.bf16 %v734_v54, %v733_v53  ;;  %v1024_v58 = vadd.f32 %v1023_v56, %v1022_v55  ;;  %v1025_v59 = vpop.f32.mrb[14].mxu1 }
 0x239   :  { %v1026_v60 = vpop.f32.mrb[15].mxu1 }
 0x23a   :  { %956 = vst [vmem:[#allocation12 + $0x20] sm:$0xff] %v936_v57   ;;  %v703_v61 = vadd.f32 %v1024_v58, %v1367_v1  ;;  %v1027_v62 = vadd.f32 %v1026_v60, %v1025_v59 }
 0x23c   :  { %v706_v63 = vadd.f32 %v1027_v62, %v1367_v1  ;;  %v735_v0 = vmax.f32 %v703_v61, 0.0 }
 0x23e   :  { %v736_v2 = vmax.f32 %v706_v63, 0.0  ;;  %v1028_v3 = vpop.f32.mrb[16].mxu1 }
 0x23f   :  { %v1029_v4 = vpop.f32.mrb[17].mxu1 }
 0x240   :  { %v941_v5 = vpack.c.bf16 %v736_v2, %v735_v0  ;;  %v1030_v6 = vadd.f32 %v1029_v4, %v1028_v3  ;;  %v1031_v7 = vpop.f32.mrb[18].mxu1 }
 0x241   :  { %v1032_v8 = vpop.f32.mrb[19].mxu1 }
 0x242   :  { %957 = vst [vmem:[#allocation12 + $0x28] sm:$0xff] %v941_v5   ;;  %v711_v9 = vadd.f32 %v1030_v6, %v1367_v1  ;;  %v1033_v10 = vadd.f32 %v1032_v8, %v1031_v7 }
 0x244   :  { %v714_v11 = vadd.f32 %v1033_v10, %v1367_v1  ;;  %v737_v12 = vmax.f32 %v711_v9, 0.0 }
 0x246   :  { %v738_v13 = vmax.f32 %v714_v11, 0.0  ;;  %v1034_v14 = vpop.f32.mrb[20].mxu1 }
 0x247   :  { %v1035_v15 = vpop.f32.mrb[21].mxu1 }
 0x248   :  { %v946_v16 = vpack.c.bf16 %v738_v13, %v737_v12  ;;  %v1036_v17 = vadd.f32 %v1035_v15, %v1034_v14  ;;  %v1037_v18 = vpop.f32.mrb[22].mxu1 }
 0x249   :  { %v1038_v19 = vpop.f32.mrb[23].mxu1 }
 0x24a   :  { %958 = vst [vmem:[#allocation12 + $0x30] sm:$0xff] %v946_v16   ;;  %v719_v20 = vadd.f32 %v1036_v17, %v1367_v1  ;;  %v1039_v21 = vadd.f32 %v1038_v19, %v1037_v18 }
 0x24c   :  { %v722_v22 = vadd.f32 %v1039_v21, %v1367_v1  ;;  %v739_v23 = vmax.f32 %v719_v20, 0.0 }
 0x24e   :  { %v740_v24 = vmax.f32 %v722_v22, 0.0 }
 0x250   :  { %v951_v25 = vpack.c.bf16 %v740_v24, %v739_v23 }
 0x252   :  { %959 = vst [vmem:[#allocation12 + $0x38] sm:$0xff] %v951_v25  }
 0x253   :  { %1234 = shalt.err (!%p1231_p8)
}
 0x254   :  { %s1235_s22 = scalar_lea.hbm %s1405_s5, 1024 }
 0x255   :  { %p1236_p9 = scmp.ne.s32.totalorder %s1405_s5, %s1235_s22  ;;  %p1239_p10 = scmp.lt.u32.totalorder %s1235_s22, %s1405_s5 }
 0x257   :  { %p1241_p11 = pnand %p1239_p10, %p1236_p9 }
 0x259   :  { %1244 = shalt.err (!%p1241_p11)
}
 0x25a   :  { %832 = dma.vmem_to_hbm [thread:$0]  %s827_s17, 1024, %s1405_s5, [#allocation6], %s1255_s30, %s1255_s30, %s1256_s6  }
 0x25b   :  { %1251 = dma.done.wait [#allocation6], 1024  }
 0x25c   :  { %1252 = vsyncadd [#allocation6], 4294966272 }
 0x25d   :  { %836 = vsyncpa [#allocation5], 1 }
 0x25e   :  { %837 = vsyncpa [#allocation8], 1 }
 0x25f   :  { %838 = vsyncpa [#allocation11], 1 }
 0x260   :  { %839 = vsyncpa [#allocation6], 1 }

</bundles_post_ra>
